<compile_context>
chip_gen: v7x
topology: tpu7x:2x2x1
jax: 0.10.0
libtpu: 0.0.40
codegen_flags: <defaults>
</compile_context>

<pallas_src>
import functools
import math

import jax
import jax.numpy as jnp
from jax.experimental import pallas as pl
from jax.experimental.pallas import tpu as pltpu


# ---------------------------------------------------------------------------
# Config (small, consistent with the module's forward)
# ---------------------------------------------------------------------------
BATCH = 2
SEQ = 8
HIDDEN = 32
NUM_HEADS = 4
HEAD_SIZE = HIDDEN // NUM_HEADS
LN_EPS = 1e-5          # nn.LayerNorm default

# MXU input dtype: bf16 is the native path on v5e/v6e/v7x. Accumulation,
# softmax and LayerNorm stay float32. Set to jnp.float32 for exact-parity
# validation builds.
MATMUL_DTYPE = jnp.bfloat16

# Self-check tolerance vs. the f32 reference: bf16 matmul inputs (~2^-8 rel per
# stage, 4 MXU stages) + EUP approx reciprocal on O(1) LayerNorm-ed outputs.
TOL = 5e-2 if MATMUL_DTYPE == jnp.bfloat16 else 5e-4


# ---------------------------------------------------------------------------
# Kernel: one grid step per batch element (grid axis is "parallel").
# ---------------------------------------------------------------------------
def self_attention_kernel(
    x_ref,      # (S, H)     bf16 input activations for this batch element
    mask_ref,   # (S, S)     f32 additive attention mask (0 / -10000)
    wqkv_ref,   # (H, 3H)    bf16 packed [Wq.T | Wk.T | Wv.T]
    wo_ref,     # (H, H)     bf16 Wo.T (output dense)
    vec_ref,    # (4, 3H)    f32 rows: [bq|bk|bv], [bo|0|0], [gamma|0|0], [beta|0|0]
    out_ref,    # (S, H)     f32 output
    *, num_heads, head_size,
):
    S, H = x_ref.shape
    scale = 1.0 / math.sqrt(head_size)

    x_bf = x_ref[...]                                        # (S, H) bf16

    # --- fused Q/K/V projection: ONE lane-dense MXU matmul, f32 accumulation
    qkv = jnp.dot(x_bf, wqkv_ref[...],
                  preferred_element_type=jnp.float32)        # (S, 3H) f32
    qkv = qkv + vec_ref[0:1, :]                              # + [bq | bk | bv]

    mask = mask_ref[...]                                     # (S, S) f32

    # --- per-head attention (unrolled); f32 softmax, EUP approx reciprocal ---
    ctx_heads = []
    for h in range(num_heads):
        lo = h * head_size
        q_h = qkv[:, lo:lo + head_size].astype(MATMUL_DTYPE)             # (S, hd)
        k_h = qkv[:, H + lo:H + lo + head_size].astype(MATMUL_DTYPE)     # (S, hd)
        v_h = qkv[:, 2 * H + lo:2 * H + lo + head_size].astype(MATMUL_DTYPE)
        # scores = q @ k^T / sqrt(hd) + mask   (contract last dims, no transpose)
        s = jax.lax.dot_general(
            q_h, k_h, dimension_numbers=(((1,), (1,)), ((), ())),
            preferred_element_type=jnp.float32) * scale + mask           # (S, S)
        s = s - jnp.max(s, axis=-1, keepdims=True)
        e = jnp.exp(s)
        p = e * pl.reciprocal(jnp.sum(e, axis=-1, keepdims=True), approx=True)
        # TODO(synk): attention-prob dropout (training mode) not implemented.
        ctx_heads.append(jnp.dot(p.astype(MATMUL_DTYPE), v_h,
                                 preferred_element_type=jnp.float32))    # (S, hd)

    # --- concat heads along lanes; output dense folds the head sum into one
    #     lane-dense (S, H) @ (H, H) MXU contraction (no (NH,S,H) intermediate).
    ctx = jnp.concatenate(ctx_heads, axis=-1)                # (S, H) f32
    hidden = jnp.dot(ctx.astype(MATMUL_DTYPE), wo_ref[...],
                     preferred_element_type=jnp.float32) + vec_ref[1:2, 0:H]
    # TODO(synk): out_dropout (training mode) not implemented.

    # --- residual + LayerNorm (f32 elementwise, biased variance) -------------
    resid = hidden + x_bf.astype(jnp.float32)
    mean = jnp.mean(resid, axis=-1, keepdims=True)
    cen = resid - mean
    var = jnp.mean(cen * cen, axis=-1, keepdims=True)
    inv = jax.lax.rsqrt(var + LN_EPS)
    out_ref[...] = cen * inv * vec_ref[2:3, 0:H] + vec_ref[3:4, 0:H]


# ---------------------------------------------------------------------------
# One-time parameter repacking: parameter-load time, OFF the dispatch path.
# ---------------------------------------------------------------------------
def prepack_params(params):
    wq, bq, wk, bk, wv, bv, wo, bo, gamma, beta = params
    H = wq.shape[0]
    # torch Linear: y = x @ W.T + b, with W stored as [out_features, in_features].
    w_qkv = jnp.concatenate([wq.T, wk.T, wv.T], axis=1).astype(MATMUL_DTYPE)  # (H, 3H)
    w_out = wo.T.astype(MATMUL_DTYPE)                                          # (H, H)
    pad = jnp.zeros((2 * H,), jnp.float32)
    vecs = jnp.stack([
        jnp.concatenate([bq, bk, bv]),        # row 0: qkv bias, lane-dense (3H,)
        jnp.concatenate([bo, pad]),           # row 1: dense bias in lanes [0, H)
        jnp.concatenate([gamma, pad]),        # row 2: LN gamma   in lanes [0, H)
        jnp.concatenate([beta, pad]),         # row 3: LN beta    in lanes [0, H)
    ]).astype(jnp.float32)                    # (4, 3H)
    return w_qkv, w_out, vecs


# ---------------------------------------------------------------------------
# Dispatch-path wrapper: one bf16 cast of x + one pallas_call.
# ---------------------------------------------------------------------------
@jax.jit
def self_attention_layer(x, attention_mask, w_qkv, w_out, vecs):
    """SelfAttentionLayer forward.

    x:              (B, S, H) float32
    attention_mask: (B, 1, S, S) additive mask (0 attended / -10000 masked)
    w_qkv, w_out, vecs: prepacked parameters from prepack_params().
    """
    B, S, H = x.shape
    NH = NUM_HEADS
    hd = H // NH

    kernel = functools.partial(self_attention_kernel, num_heads=NH, head_size=hd)

    out = pl.pallas_call(
        kernel,
        out_shape=jax.ShapeDtypeStruct((B, S, H), jnp.float32),
        grid=(B,),
        in_specs=[
            pl.BlockSpec((None, S, H), lambda b: (b, 0, 0)),            # x (per batch)
            pl.BlockSpec((None, None, S, S), lambda b: (b, 0, 0, 0)),   # mask (per batch)
            pl.BlockSpec((H, 3 * H), lambda b: (0, 0)),                 # W_qkv (resident)
            pl.BlockSpec((H, H), lambda b: (0, 0)),                     # W_out (resident)
            pl.BlockSpec((4, 3 * H), lambda b: (0, 0)),                 # packed vectors
        ],
        out_specs=pl.BlockSpec((None, S, H), lambda b: (b, 0, 0)),
        compiler_params=pltpu.CompilerParams(
            dimension_semantics=("parallel",)),   # v7x: batch elements across cores
    )(x.astype(MATMUL_DTYPE), attention_mask.astype(jnp.float32),
      w_qkv, w_out, vecs)
    return out


# ---------------------------------------------------------------------------
# Pure-JAX f32 reference (mirrors the PyTorch module) for the self-check.
# ---------------------------------------------------------------------------
def reference_self_attention(x, attention_mask, params):
    wq, bq, wk, bk, wv, bv, wo, bo, gamma, beta = params
    B, S, H = x.shape
    NH, hd = NUM_HEADS, H // NUM_HEADS

    def heads(t):
        return t.reshape(B, S, NH, hd).transpose(0, 2, 1, 3)

    q = heads(x @ wq.T + bq)
    k = heads(x @ wk.T + bk)
    v = heads(x @ wv.T + bv)
    scores = jnp.einsum('bhqd,bhkd->bhqk', q, k) / math.sqrt(hd) + attention_mask
    probs = jax.nn.softmax(scores, axis=-1)
    ctx = jnp.einsum('bhqk,bhkd->bhqd', probs, v)
    ctx = ctx.transpose(0, 2, 1, 3).reshape(B, S, H)
    hidden = ctx @ wo.T + bo
    resid = hidden + x
    mean = resid.mean(-1, keepdims=True)
    var = ((resid - mean) ** 2).mean(-1, keepdims=True)
    return (resid - mean) * jax.lax.rsqrt(var + LN_EPS) * gamma + beta


# ---------------------------------------------------------------------------
# Deterministic parameter init (xavier_uniform weights, zero bias,
# LayerNorm gamma=1 / beta=0) — matching init_weights / nn defaults.
# ---------------------------------------------------------------------------
def xavier_uniform(key, out_features, in_features):
    limit = math.sqrt(6.0 / (in_features + out_features))
    return jax.random.uniform(
        key, (out_features, in_features), jnp.float32, -limit, limit)


def make_params(key, hidden):
    keys = jax.random.split(key, 4)
    wq = xavier_uniform(keys[0], hidden, hidden)   # [out, in] (PyTorch layout)
    wk = xavier_uniform(keys[1], hidden, hidden)
    wv = xavier_uniform(keys[2], hidden, hidden)
    wo = xavier_uniform(keys[3], hidden, hidden)
    zeros_b = jnp.zeros((hidden,), jnp.float32)
    gamma = jnp.ones((hidden,), jnp.float32)
    beta = jnp.zeros((hidden,), jnp.float32)
    return (wq, zeros_b, wk, zeros_b, wv, zeros_b, wo, zeros_b, gamma, beta)


if __name__ == "__main__":
    key = jax.random.PRNGKey(0)
    k_ids, k_x, k_params = jax.random.split(key, 3)

    x = jax.random.normal(k_x, (BATCH, SEQ, HIDDEN), jnp.float32)

    # SASRec-style extended attention mask: key-padding x causal, additive form.
    input_ids = jax.random.randint(k_ids, (BATCH, SEQ), 0, 5)       # 0 == padding
    pad = (input_ids > 0).astype(jnp.float32)                       # (B, S)
    causal = jnp.tril(jnp.ones((SEQ, SEQ), jnp.float32))            # (S, S)
    ext = pad[:, None, None, :] * causal[None, None, :, :]          # (B, 1, S, S)
    attention_mask = (1.0 - ext) * -10000.0

    params = make_params(k_params, HIDDEN)
    packed = prepack_params(params)     # once, at parameter-load time

    out = self_attention_layer(x, attention_mask, *packed)
    jax.block_until_ready(out)

    ref = reference_self_attention(x, attention_mask, params)

    assert out.shape == (BATCH, SEQ, HIDDEN)
    assert bool(jnp.all(jnp.isfinite(out)))
    max_err = float(jnp.max(jnp.abs(out - ref)))
    assert max_err < TOL, f"max abs error vs reference: {max_err}"
    print("KERNEL_OK")
</pallas_src>

<mosaic_0001>
module attributes {stable_mosaic.version = 11 : i64} {
  func.func @self_attention_kernel(%arg0: i32, %arg1: memref<1x8x32xbf16, #tpu.memory_space<vmem>>, %arg2: memref<1x1x8x8xf32, #tpu.memory_space<vmem>>, %arg3: memref<32x96xbf16, #tpu.memory_space<vmem>>, %arg4: memref<32x32xbf16, #tpu.memory_space<vmem>>, %arg5: memref<4x96xf32, #tpu.memory_space<vmem>>, %arg6: memref<1x8x32xf32, #tpu.memory_space<vmem>>) attributes {dimension_semantics = [#tpu.dimension_semantics<parallel>], iteration_bounds = array<i64: 2>, scalar_prefetch = 0 : i64, scratch_operands = 0 : i64, tpu.core_type = #tpu.core_type<tc>, window_params = [{transform_indices = @transform_0, window_bounds = array<i64: 1, 8, 32>}, {transform_indices = @transform_1, window_bounds = array<i64: 1, 1, 8, 8>}, {pipeline_mode = #tpu.pipeline_mode<synchronous>, transform_indices = @transform_2, window_bounds = array<i64: 32, 96>}, {pipeline_mode = #tpu.pipeline_mode<synchronous>, transform_indices = @transform_3, window_bounds = array<i64: 32, 32>}, {pipeline_mode = #tpu.pipeline_mode<synchronous>, transform_indices = @transform_4, window_bounds = array<i64: 4, 96>}, {transform_indices = @transform_5, window_bounds = array<i64: 1, 8, 32>}]} {
    %c0 = arith.constant 0 : index
    %c0_0 = arith.constant 0 : index
    %c0_1 = arith.constant 0 : index
    %0 = vector.load %arg1[%c0, %c0_0, %c0_1] : memref<1x8x32xbf16, #tpu.memory_space<vmem>>, vector<1x8x32xbf16>
    %1 = vector.shape_cast %0 : vector<1x8x32xbf16> to vector<8x32xbf16>
    %c0_2 = arith.constant 0 : index
    %c0_3 = arith.constant 0 : index
    %2 = vector.load %arg3[%c0_2, %c0_3] : memref<32x96xbf16, #tpu.memory_space<vmem>>, vector<32x96xbf16>
    %cst = arith.constant dense<0.000000e+00> : vector<8x96xf32>
    %3 = tpu.matmul %1, %2, %cst {dimension_numbers = #tpu.dot_dimension_numbers<[1], [0], [0], [1], [0, 0, 1, 1], [], []>} : vector<8x32xbf16>, vector<32x96xbf16>, vector<8x96xf32> -> vector<8x96xf32>
    %c0_4 = arith.constant 0 : index
    %c0_5 = arith.constant 0 : index
    %4 = vector.load %arg5[%c0_4, %c0_5] : memref<4x96xf32, #tpu.memory_space<vmem>>, vector<1x96xf32>
    %5 = vector.broadcast %4 : vector<1x96xf32> to vector<8x96xf32>
    %6 = arith.addf %3, %5 : vector<8x96xf32>
    %c0_6 = arith.constant 0 : index
    %c0_7 = arith.constant 0 : index
    %c0_8 = arith.constant 0 : index
    %c0_9 = arith.constant 0 : index
    %7 = vector.load %arg2[%c0_6, %c0_7, %c0_8, %c0_9] : memref<1x1x8x8xf32, #tpu.memory_space<vmem>>, vector<1x1x8x8xf32>
    %8 = vector.shape_cast %7 : vector<1x1x8x8xf32> to vector<8x8xf32>
    %9 = vector.extract_strided_slice %6 {offsets = [0, 0], sizes = [8, 8], strides = [1, 1]} : vector<8x96xf32> to vector<8x8xf32>
    %10 = arith.truncf %9 : vector<8x8xf32> to vector<8x8xbf16>
    %11 = vector.extract_strided_slice %6 {offsets = [0, 32], sizes = [8, 8], strides = [1, 1]} : vector<8x96xf32> to vector<8x8xf32>
    %12 = arith.truncf %11 : vector<8x8xf32> to vector<8x8xbf16>
    %13 = vector.extract_strided_slice %6 {offsets = [0, 64], sizes = [8, 8], strides = [1, 1]} : vector<8x96xf32> to vector<8x8xf32>
    %14 = arith.truncf %13 : vector<8x8xf32> to vector<8x8xbf16>
    %cst_10 = arith.constant dense<0.000000e+00> : vector<8x8xf32>
    %15 = tpu.matmul %10, %12, %cst_10 {dimension_numbers = #tpu.dot_dimension_numbers<[1], [1], [0], [0], [0, 0, 1, 0], [], []>} : vector<8x8xbf16>, vector<8x8xbf16>, vector<8x8xf32> -> vector<8x8xf32>
    %cst_11 = arith.constant 0.353553385 : f32
    %16 = vector.broadcast %cst_11 : f32 to vector<8x8xf32>
    %17 = arith.mulf %15, %16 : vector<8x8xf32>
    %18 = arith.addf %17, %8 : vector<8x8xf32>
    %cst_12 = arith.constant dense<0xFF800000> : vector<8xf32>
    %19 = vector.multi_reduction <maximumf>, %18, %cst_12 [1] : vector<8x8xf32> to vector<8xf32>
    %20 = vector.shape_cast %19 : vector<8xf32> to vector<8x1xf32>
    %21 = vector.broadcast %20 : vector<8x1xf32> to vector<8x8xf32>
    %22 = arith.subf %18, %21 : vector<8x8xf32>
    %23 = math.exp %22 : vector<8x8xf32>
    %cst_13 = arith.constant dense<0.000000e+00> : vector<8xf32>
    %24 = vector.multi_reduction <add>, %23, %cst_13 [1] : vector<8x8xf32> to vector<8xf32>
    %25 = vector.shape_cast %24 : vector<8xf32> to vector<8x1xf32>
    %26 = tpu.reciprocal %25 {approx = true} : vector<8x1xf32> -> vector<8x1xf32>
    %27 = vector.broadcast %26 : vector<8x1xf32> to vector<8x8xf32>
    %28 = arith.mulf %23, %27 : vector<8x8xf32>
    %29 = arith.truncf %28 : vector<8x8xf32> to vector<8x8xbf16>
    %cst_14 = arith.constant dense<0.000000e+00> : vector<8x8xf32>
    %30 = tpu.matmul %29, %14, %cst_14 {dimension_numbers = #tpu.dot_dimension_numbers<[1], [0], [0], [1], [0, 0, 1, 1], [], []>} : vector<8x8xbf16>, vector<8x8xbf16>, vector<8x8xf32> -> vector<8x8xf32>
    %31 = vector.extract_strided_slice %6 {offsets = [0, 8], sizes = [8, 8], strides = [1, 1]} : vector<8x96xf32> to vector<8x8xf32>
    %32 = arith.truncf %31 : vector<8x8xf32> to vector<8x8xbf16>
    %33 = vector.extract_strided_slice %6 {offsets = [0, 40], sizes = [8, 8], strides = [1, 1]} : vector<8x96xf32> to vector<8x8xf32>
    %34 = arith.truncf %33 : vector<8x8xf32> to vector<8x8xbf16>
    %35 = vector.extract_strided_slice %6 {offsets = [0, 72], sizes = [8, 8], strides = [1, 1]} : vector<8x96xf32> to vector<8x8xf32>
    %36 = arith.truncf %35 : vector<8x8xf32> to vector<8x8xbf16>
    %cst_15 = arith.constant dense<0.000000e+00> : vector<8x8xf32>
    %37 = tpu.matmul %32, %34, %cst_15 {dimension_numbers = #tpu.dot_dimension_numbers<[1], [1], [0], [0], [0, 0, 1, 0], [], []>} : vector<8x8xbf16>, vector<8x8xbf16>, vector<8x8xf32> -> vector<8x8xf32>
    %cst_16 = arith.constant 0.353553385 : f32
    %38 = vector.broadcast %cst_16 : f32 to vector<8x8xf32>
    %39 = arith.mulf %37, %38 : vector<8x8xf32>
    %40 = arith.addf %39, %8 : vector<8x8xf32>
    %cst_17 = arith.constant dense<0xFF800000> : vector<8xf32>
    %41 = vector.multi_reduction <maximumf>, %40, %cst_17 [1] : vector<8x8xf32> to vector<8xf32>
    %42 = vector.shape_cast %41 : vector<8xf32> to vector<8x1xf32>
    %43 = vector.broadcast %42 : vector<8x1xf32> to vector<8x8xf32>
    %44 = arith.subf %40, %43 : vector<8x8xf32>
    %45 = math.exp %44 : vector<8x8xf32>
    %cst_18 = arith.constant dense<0.000000e+00> : vector<8xf32>
    %46 = vector.multi_reduction <add>, %45, %cst_18 [1] : vector<8x8xf32> to vector<8xf32>
    %47 = vector.shape_cast %46 : vector<8xf32> to vector<8x1xf32>
    %48 = tpu.reciprocal %47 {approx = true} : vector<8x1xf32> -> vector<8x1xf32>
    %49 = vector.broadcast %48 : vector<8x1xf32> to vector<8x8xf32>
    %50 = arith.mulf %45, %49 : vector<8x8xf32>
    %51 = arith.truncf %50 : vector<8x8xf32> to vector<8x8xbf16>
    %cst_19 = arith.constant dense<0.000000e+00> : vector<8x8xf32>
    %52 = tpu.matmul %51, %36, %cst_19 {dimension_numbers = #tpu.dot_dimension_numbers<[1], [0], [0], [1], [0, 0, 1, 1], [], []>} : vector<8x8xbf16>, vector<8x8xbf16>, vector<8x8xf32> -> vector<8x8xf32>
    %53 = vector.extract_strided_slice %6 {offsets = [0, 16], sizes = [8, 8], strides = [1, 1]} : vector<8x96xf32> to vector<8x8xf32>
    %54 = arith.truncf %53 : vector<8x8xf32> to vector<8x8xbf16>
    %55 = vector.extract_strided_slice %6 {offsets = [0, 48], sizes = [8, 8], strides = [1, 1]} : vector<8x96xf32> to vector<8x8xf32>
    %56 = arith.truncf %55 : vector<8x8xf32> to vector<8x8xbf16>
    %57 = vector.extract_strided_slice %6 {offsets = [0, 80], sizes = [8, 8], strides = [1, 1]} : vector<8x96xf32> to vector<8x8xf32>
    %58 = arith.truncf %57 : vector<8x8xf32> to vector<8x8xbf16>
    %cst_20 = arith.constant dense<0.000000e+00> : vector<8x8xf32>
    %59 = tpu.matmul %54, %56, %cst_20 {dimension_numbers = #tpu.dot_dimension_numbers<[1], [1], [0], [0], [0, 0, 1, 0], [], []>} : vector<8x8xbf16>, vector<8x8xbf16>, vector<8x8xf32> -> vector<8x8xf32>
    %cst_21 = arith.constant 0.353553385 : f32
    %60 = vector.broadcast %cst_21 : f32 to vector<8x8xf32>
    %61 = arith.mulf %59, %60 : vector<8x8xf32>
    %62 = arith.addf %61, %8 : vector<8x8xf32>
    %cst_22 = arith.constant dense<0xFF800000> : vector<8xf32>
    %63 = vector.multi_reduction <maximumf>, %62, %cst_22 [1] : vector<8x8xf32> to vector<8xf32>
    %64 = vector.shape_cast %63 : vector<8xf32> to vector<8x1xf32>
    %65 = vector.broadcast %64 : vector<8x1xf32> to vector<8x8xf32>
    %66 = arith.subf %62, %65 : vector<8x8xf32>
    %67 = math.exp %66 : vector<8x8xf32>
    %cst_23 = arith.constant dense<0.000000e+00> : vector<8xf32>
    %68 = vector.multi_reduction <add>, %67, %cst_23 [1] : vector<8x8xf32> to vector<8xf32>
    %69 = vector.shape_cast %68 : vector<8xf32> to vector<8x1xf32>
    %70 = tpu.reciprocal %69 {approx = true} : vector<8x1xf32> -> vector<8x1xf32>
    %71 = vector.broadcast %70 : vector<8x1xf32> to vector<8x8xf32>
    %72 = arith.mulf %67, %71 : vector<8x8xf32>
    %73 = arith.truncf %72 : vector<8x8xf32> to vector<8x8xbf16>
    %cst_24 = arith.constant dense<0.000000e+00> : vector<8x8xf32>
    %74 = tpu.matmul %73, %58, %cst_24 {dimension_numbers = #tpu.dot_dimension_numbers<[1], [0], [0], [1], [0, 0, 1, 1], [], []>} : vector<8x8xbf16>, vector<8x8xbf16>, vector<8x8xf32> -> vector<8x8xf32>
    %75 = vector.extract_strided_slice %6 {offsets = [0, 24], sizes = [8, 8], strides = [1, 1]} : vector<8x96xf32> to vector<8x8xf32>
    %76 = arith.truncf %75 : vector<8x8xf32> to vector<8x8xbf16>
    %77 = vector.extract_strided_slice %6 {offsets = [0, 56], sizes = [8, 8], strides = [1, 1]} : vector<8x96xf32> to vector<8x8xf32>
    %78 = arith.truncf %77 : vector<8x8xf32> to vector<8x8xbf16>
    %79 = vector.extract_strided_slice %6 {offsets = [0, 88], sizes = [8, 8], strides = [1, 1]} : vector<8x96xf32> to vector<8x8xf32>
    %80 = arith.truncf %79 : vector<8x8xf32> to vector<8x8xbf16>
    %cst_25 = arith.constant dense<0.000000e+00> : vector<8x8xf32>
    %81 = tpu.matmul %76, %78, %cst_25 {dimension_numbers = #tpu.dot_dimension_numbers<[1], [1], [0], [0], [0, 0, 1, 0], [], []>} : vector<8x8xbf16>, vector<8x8xbf16>, vector<8x8xf32> -> vector<8x8xf32>
    %cst_26 = arith.constant 0.353553385 : f32
    %82 = vector.broadcast %cst_26 : f32 to vector<8x8xf32>
    %83 = arith.mulf %81, %82 : vector<8x8xf32>
    %84 = arith.addf %83, %8 : vector<8x8xf32>
    %cst_27 = arith.constant dense<0xFF800000> : vector<8xf32>
    %85 = vector.multi_reduction <maximumf>, %84, %cst_27 [1] : vector<8x8xf32> to vector<8xf32>
    %86 = vector.shape_cast %85 : vector<8xf32> to vector<8x1xf32>
    %87 = vector.broadcast %86 : vector<8x1xf32> to vector<8x8xf32>
    %88 = arith.subf %84, %87 : vector<8x8xf32>
    %89 = math.exp %88 : vector<8x8xf32>
    %cst_28 = arith.constant dense<0.000000e+00> : vector<8xf32>
    %90 = vector.multi_reduction <add>, %89, %cst_28 [1] : vector<8x8xf32> to vector<8xf32>
    %91 = vector.shape_cast %90 : vector<8xf32> to vector<8x1xf32>
    %92 = tpu.reciprocal %91 {approx = true} : vector<8x1xf32> -> vector<8x1xf32>
    %93 = vector.broadcast %92 : vector<8x1xf32> to vector<8x8xf32>
    %94 = arith.mulf %89, %93 : vector<8x8xf32>
    %95 = arith.truncf %94 : vector<8x8xf32> to vector<8x8xbf16>
    %cst_29 = arith.constant dense<0.000000e+00> : vector<8x8xf32>
    %96 = tpu.matmul %95, %80, %cst_29 {dimension_numbers = #tpu.dot_dimension_numbers<[1], [0], [0], [1], [0, 0, 1, 1], [], []>} : vector<8x8xbf16>, vector<8x8xbf16>, vector<8x8xf32> -> vector<8x8xf32>
    %97 = tpu.concatenate %30, %52, %74, %96 in 1 : vector<8x8xf32>, vector<8x8xf32>, vector<8x8xf32>, vector<8x8xf32> -> vector<8x32xf32>
    %98 = arith.truncf %97 : vector<8x32xf32> to vector<8x32xbf16>
    %c0_30 = arith.constant 0 : index
    %c0_31 = arith.constant 0 : index
    %99 = vector.load %arg4[%c0_30, %c0_31] : memref<32x32xbf16, #tpu.memory_space<vmem>>, vector<32x32xbf16>
    %cst_32 = arith.constant dense<0.000000e+00> : vector<8x32xf32>
    %100 = tpu.matmul %98, %99, %cst_32 {dimension_numbers = #tpu.dot_dimension_numbers<[1], [0], [0], [1], [0, 0, 1, 1], [], []>} : vector<8x32xbf16>, vector<32x32xbf16>, vector<8x32xf32> -> vector<8x32xf32>
    %c1 = arith.constant 1 : index
    %c0_33 = arith.constant 0 : index
    %101 = vector.load %arg5[%c1, %c0_33] : memref<4x96xf32, #tpu.memory_space<vmem>>, vector<1x32xf32>
    %102 = vector.broadcast %101 : vector<1x32xf32> to vector<8x32xf32>
    %103 = arith.addf %100, %102 : vector<8x32xf32>
    %104 = arith.extf %1 : vector<8x32xbf16> to vector<8x32xf32>
    %105 = arith.addf %103, %104 : vector<8x32xf32>
    %cst_34 = arith.constant dense<0.000000e+00> : vector<8xf32>
    %106 = vector.multi_reduction <add>, %105, %cst_34 [1] : vector<8x32xf32> to vector<8xf32>
    %107 = vector.shape_cast %106 : vector<8xf32> to vector<8x1xf32>
    %cst_35 = arith.constant 3.200000e+01 : f32
    %108 = vector.broadcast %cst_35 : f32 to vector<8x1xf32>
    %109 = arith.divf %107, %108 : vector<8x1xf32>
    %110 = vector.broadcast %109 : vector<8x1xf32> to vector<8x32xf32>
    %111 = arith.subf %105, %110 : vector<8x32xf32>
    %112 = arith.mulf %111, %111 : vector<8x32xf32>
    %cst_36 = arith.constant dense<0.000000e+00> : vector<8xf32>
    %113 = vector.multi_reduction <add>, %112, %cst_36 [1] : vector<8x32xf32> to vector<8xf32>
    %114 = vector.shape_cast %113 : vector<8xf32> to vector<8x1xf32>
    %cst_37 = arith.constant 3.200000e+01 : f32
    %115 = vector.broadcast %cst_37 : f32 to vector<8x1xf32>
    %116 = arith.divf %114, %115 : vector<8x1xf32>
    %cst_38 = arith.constant 9.99999974E-6 : f32
    %117 = vector.broadcast %cst_38 : f32 to vector<8x1xf32>
    %118 = arith.addf %116, %117 : vector<8x1xf32>
    %119 = math.rsqrt %118 : vector<8x1xf32>
    %120 = vector.broadcast %119 : vector<8x1xf32> to vector<8x32xf32>
    %121 = arith.mulf %111, %120 : vector<8x32xf32>
    %c2 = arith.constant 2 : index
    %c0_39 = arith.constant 0 : index
    %122 = vector.load %arg5[%c2, %c0_39] : memref<4x96xf32, #tpu.memory_space<vmem>>, vector<1x32xf32>
    %123 = vector.broadcast %122 : vector<1x32xf32> to vector<8x32xf32>
    %124 = arith.mulf %121, %123 : vector<8x32xf32>
    %c3 = arith.constant 3 : index
    %c0_40 = arith.constant 0 : index
    %125 = vector.load %arg5[%c3, %c0_40] : memref<4x96xf32, #tpu.memory_space<vmem>>, vector<1x32xf32>
    %126 = vector.broadcast %125 : vector<1x32xf32> to vector<8x32xf32>
    %127 = arith.addf %124, %126 : vector<8x32xf32>
    %c0_41 = arith.constant 0 : index
    %c0_42 = arith.constant 0 : index
    %c0_43 = arith.constant 0 : index
    %128 = vector.load %arg6[%c0_41, %c0_42, %c0_43] : memref<1x8x32xf32, #tpu.memory_space<vmem>>, vector<1x8x32xf32>
    %129 = vector.shape_cast %128 : vector<1x8x32xf32> to vector<8x32xf32>
    %130 = vector.shape_cast %127 : vector<8x32xf32> to vector<1x8x32xf32>
    tpu.vector_store %arg6[%c0_41, %c0_42, %c0_43], %130 {strides = array<i32>} : memref<1x8x32xf32, #tpu.memory_space<vmem>>, vector<1x8x32xf32>,
    return
  }
  func.func @transform_0(%arg0: i32) -> (i32, i32, i32) {
    %c0_i32 = arith.constant 0 : i32
    %c0_i32_0 = arith.constant 0 : i32
    %c0_i32_1 = arith.constant 0 : i32
    return %arg0, %c0_i32, %c0_i32_0 : i32, i32, i32
  }
  func.func @transform_1(%arg0: i32) -> (i32, i32, i32, i32) {
    %c0_i32 = arith.constant 0 : i32
    %c0_i32_0 = arith.constant 0 : i32
    %c0_i32_1 = arith.constant 0 : i32
    %c0_i32_2 = arith.constant 0 : i32
    return %arg0, %c0_i32, %c0_i32_0, %c0_i32_1 : i32, i32, i32, i32
  }
  func.func @transform_2(%arg0: i32) -> (i32, i32) {
    %c0_i32 = arith.constant 0 : i32
    %c0_i32_0 = arith.constant 0 : i32
    %c0_i32_1 = arith.constant 0 : i32
    return %c0_i32, %c0_i32_0 : i32, i32
  }
  func.func @transform_3(%arg0: i32) -> (i32, i32) {
    %c0_i32 = arith.constant 0 : i32
    %c0_i32_0 = arith.constant 0 : i32
    %c0_i32_1 = arith.constant 0 : i32
    return %c0_i32, %c0_i32_0 : i32, i32
  }
  func.func @transform_4(%arg0: i32) -> (i32, i32) {
    %c0_i32 = arith.constant 0 : i32
    %c0_i32_0 = arith.constant 0 : i32
    %c0_i32_1 = arith.constant 0 : i32
    return %c0_i32, %c0_i32_0 : i32, i32
  }
  func.func @transform_5(%arg0: i32) -> (i32, i32, i32) {
    %c0_i32 = arith.constant 0 : i32
    %c0_i32_0 = arith.constant 0 : i32
    %c0_i32_1 = arith.constant 0 : i32
    return %arg0, %c0_i32, %c0_i32_0 : i32, i32, i32
  }
}

</mosaic_0001>

<bundles_post_ra>
// kernel: self_attention_layer.1
= control target key start
LH: loop header
LB: loop body
LE: loop exit
PB: predicated region body
PF: predicated region fallthrough
CT: control target
= control target key end

     0   :  { %10 = vsyncpa [#allocation3], 0  ;;  %s1571_s0 = inlined_call_operand.vmem [shape: bf16[2,8,32], index: 0, kind: input, shape index: {}]   ;;  %s1572_s1 = inlined_call_operand.vmem [shape: f32[2,1,8,8], index: 1, kind: input, shape index: {}]   ;;  %s1573_s2 = inlined_call_operand.hbm [shape: bf16[32,96], index: 2, kind: input, shape index: {}]   ;;  %s1574_s3 = inlined_call_operand.vmem [shape: bf16[32,32], index: 3, kind: input, shape index: {}]   ;;  %s1575_s4 = inlined_call_operand.vmem [shape: f32[4,96], index: 4, kind: input, shape index: {}]   ;;  %s1576_s5 = inlined_call_operand.hbm [shape: f32[2,8,32], index: 5, kind: output, shape index: {}]  }
   0x1   :  { %11 = vsyncpa [#allocation4], 0 }
   0x2   :  { %13 = vsyncpa [#allocation4 + $0x1], 0  ;;  %s1331_s18 = smov 0   ;;  %s1333_s19 = smov 0  }
   0x3   :  { %s1335_s20 = smov 0   ;;  %s1337_s21 = smov 0  }
   0x4 LB: > { %s1352_s22 = sadd.s32 4294967295, %s1279_s21   ;;  %s978_s23 = sadd.s32 4294967294, %s1279_s21   ;;  %s1279_s21 = sphi %s1337_s21, %s1592_s21   ;;  %s1275_s20 = sphi %s1335_s20, %s1591_s20   ;;  %s1271_s19 = sphi %s1333_s19, %s1590_s19   ;;  %s1267_s18 = sphi %s1331_s18, %s1589_s18  }
   0x5   : > { %s1356_s24 = sadd.s32 1, %s1279_s21   ;;  %s141_s25 = sadd.s32 1, %s1275_s20 }
   0x6   : > { %s138_s26 = ssub.s32 %s1279_s21, %s1356_s24  ;;  %p151_p0 = scmp.ne.s32.totalorder %s1275_s20, %s1271_s19 }
   0x7   : > { %p139_p1 = scmp.eq.s32.totalorder %s138_s26, 0  ;;  %p152_p2 = scmp.eq.s32.totalorder %s1352_s22, 1 }
   0x8   : > { %p157_p3 = scmp.ne.s32.totalorder %s1271_s19, %s1267_s18  ;;  %p158_p4 = scmp.eq.s32.totalorder %s978_s23, 1 }
   0x9   : > { %s1367_s27 = scalar_select %p139_p1, %s1275_s20, %s141_s25  }
   0xa   : > { %p1369_p5 = por %p152_p2, %p151_p0  ;;  %p1373_p6 = por %p158_p4, %p157_p3 }
   0xb   : > { %p979_p7 = scmp.ge.s32.totalorder %s1279_s21, 1  ;;  %p165_p8 = scmp.lt.s32.totalorder %s1279_s21, 3 }
   0xc   : > { %s1580_s28 = scalar_select %p1369_p5, 1, 0 }
   0xd   : > { %s1581_s29 = scalar_select %p1373_p6, 1, 0 }
   0xe   : > { %p1577_p9 = scmp.eq.s32.totalorder %s1352_s22, 0  ;;  %p1380_p10 = pnand %p979_p7, %p165_p8 }
   0xf   : > { %s1281_s6 = smov [#allocation2]   ;;  %s1185_s11 = scalar_lea.hbm %s1573_s2, 256 }
  0x10   : > { %s1582_s30 = scalar_select %p1380_p10, 1, 0 }
  0x11   : > { %s177_s7 = sshll.u32 %s1281_s6, 4  ;;  %p1101_p11 = pneg %p1380_p10  ;;  %s178_s7 = int_to_ptr.vmem [resolvable:$true] %s177_s7 }
  0x12   : > { %p1186_p13 = scmp.ne.s32.totalorder %s1573_s2, %s1185_s11  ;;  %p1192_p3 = scmp.lt.u32.totalorder %s1185_s11, %s1573_s2 }
  0x13   : > { %p1388_p12 = pnand %p1577_p9, %p1101_p11 }
  0x15   : > { %p1187_p0 = pneg %p1388_p12 }
  0x17   : > { %p1188_p1 = pnand %p1187_p0, %p1186_p13 }
  0x19   : > { %p1189_p2 = pneg %p1188_p1 }
  0x1b   : > { %p1194_p4 = pnand %p1192_p3, %p1189_p2 }
  0x1d   : > { %1197 = shalt.err (!%p1194_p4)
}
  0x1e   : > { %s1198_s16 = scalar_lea.vmem %s178_s7, 256  ;;  %p1206_p9 = scmp.lt.s32.totalorder %s178_s7, %s178_s7 }
  0x1f   : > { %p1199_p7 = scmp.ne.s32.totalorder %s178_s7, %s1198_s16  ;;  %p1207_p6 = scmp.lt.s32.totalorder %s1198_s16, %s1198_s16 }
  0x21   : > { %p1201_p8 = pnand %p1199_p7, %p1187_p0  ;;  %p1208_p5 = por %p1207_p6, %p1206_p9 }
  0x23   : > { %p1202_p11 = pneg %p1201_p8 }
  0x25   : > { %p1209_p10 = pnand %p1208_p5, %p1202_p11 }
  0x27   : > { %1212 = shalt.err (!%p1209_p10)
}
  0x28   : > { %s1282_s17 = smov 64   ;;  %s1283_s23 = smov 4  }
  0x29   : > { %1104 = dma.hbm_to_vmem [thread:$0]  (!%p1388_p12), %s1573_s2, 256, %s178_s7, [#allocation3], %s1282_s17, %s1282_s17, %s1283_s23  }
  0x2a   : > { %p1584_p13 = scmp.ne.s32.totalorder %s1582_s30, 0 }
  0x2b   : > { %p1585_p1 = scmp.eq.s32.totalorder (!%p1584_p13), %s1352_s22, 0 }
  0x2c   : > { %213 = sbr.rel (%p1584_p13) target bundleno = 1868 (0x74c), region = 40 }
  0x33   : > { %1258 = dma.done.wait (%p1585_p1), [#allocation3], 256   ;;  %p1586_p0 = pmov %p1585_p1 }
  0x34   : > { %p244_p5 = scmp.lt.s32.totalorder %s1352_s22, 1  ;;  %v1284_v0 = vmov 0.0   ;;  %vm1285_vm0 = vmmov 0   ;;  %v1163_v1 = vld [vmem:[#allocation2] sm:$0xff]   ;;  %v1164_v2 = vld [vmem:[#allocation2 + $0x8] sm:$0xff]   ;;  %vm275_vm1 = vcmask 261120  }
  0x35   : > { %1260 = vsyncadd (%p1586_p0), [#allocation3], 4294967040  ;;  %1031 = vmatprep.subr.bf16.mxu0 %v1284_v0  ;;  %1035 = vmatprep.mubr.msk.bf16.mxu0 %vm1285_vm0, %v1284_v0  ;;  %v987_v4 = vld [vmem:[%s1575_s4] ss:$0 sm:$0xff]  ;;  %s1286_s12 = smov 120   ;;  %s1287_s13 = smov 96  }
  0x36   : > { %1039 = vmatprep.subr.bf16.mxu1 %v1284_v0  ;;  %1041 = vmatprep.mubr.msk.bf16.mxu1 %vm1285_vm0, %v1284_v0  ;;  %s1422_s30 = scalar_select %p244_p5, %s1352_s22, 1  ;;  %vm324_vm2 = vcmask 64512   ;;  %vm390_vm3 = vcmask 1043456   ;;  %vm783_vm4 = vcmask 130048   ;;  %vm785_vm5 = vcmask 195584  }
  0x37   : > { %1032 = vmatpush3.bf16.msra.mxu0 %v1163_v1  ;;  %s1288_s14 = smov 80   ;;  %s1289_s15 = smov 88  }
  0x38   : > { %s985_s6 = sshll.u32 %s1422_s30, 2  ;;  %1033 = vmatprep.subr.bf16.mxu0 %v1284_v0  ;;  %s1290_s16 = smov 72  }
  0x39   : > { %s247_s9 = scalar_lea.vmem %s1571_s0, %s985_s6  ;;  %s1291_s17 = smov 112  }
  0x3a   : > { %v1429_v3 = vld [vmem:[%s247_s9] sm:$0xf]  ;;  %s1292_s23 = smov 104   ;;  %s986_s25 = sshll.u32 %s1422_s30, 3 }
  0x3b   : > { %1034 = vmatpush3.bf16.msra.mxu0 %v1164_v2  ;;  %s251_s7 = scalar_lea.vmem %s1572_s1, %s986_s25  ;;  %s1293_s30 = smov 56  }
  0x3c   : > { %1045 = vmatprep.subr.bf16.mxu0 %v1284_v0  ;;  %v319_v23 = vld [vmem:[%s251_s7] sm:$0xff]  ;;  %s1294_s8 = smov 64   ;;  %s1295_s9 = smov 40  }
  0x3d   : > { %s1296_s10 = smov 48   ;;  %s1297_s11 = smov 8  }
  0x3e   : > { %1036 = vmatmul.mubr.msk.bf16.vlgmr.msra.gmra.mrb[0].mxu0 %vm275_vm1, %v1429_v3  ;;  %s241_s26 = sand.u32 1, %s1271_s19   ;;  %p1587_p9 = scmp.ne.s32.totalorder %s1580_s28, 0 }
  0x3f   : > { %1047 = vmatprep.mubr.msk.bf16.mxu0 %vm1285_vm0, %v1284_v0  ;;  %s984_s6 = sshll.u32 %s241_s26, 3 }
 0x111   : > { %v313_v5 = vpop.f32.mrb[0].mxu0 }
 0x112   : > { %v314_v6 = vadd.f32 %v987_v4, %v313_v5  ;;  %v1037_v7 = vpop.f32.mrb[1].mxu0 }
 0x113   : > { %v316_v8 = vpop.f32.mrb[2].mxu0 }
 0x114   : > { %v1439_v9 = vpack.c.bf16 %v314_v6, %v314_v6  ;;  %v1038_v10 = vpop.f32.mrb[3].mxu0 }
 0x116   : > { %434 = vrot.lane.b32.xlu1 %v1439_v9, %s1286_s12  ;;  %322 = vrot.lane.b32.xlu0 %v1439_v9, %s1287_s13 }
 0x11a   : > { %548 = vrot.lane.b32.xlu1 %v1439_v9, %s1288_s14  ;;  %436 = vrot.lane.b32.xlu0 %v1439_v9, %s1289_s15 }
 0x11e   : > { %660 = vrot.lane.b32.xlu1 %v1439_v9, %s1290_s16  ;;  %546 = vrot.lane.b32.xlu0 %v1439_v9, %s1291_s17  ;;  %s1298_s16 = smov 16   ;;  %s1299_s17 = smov 24  }
 0x122   : > { %658 = vrot.lane.b32.xlu0 %v1439_v9, %s1292_s23 }
 0x188   : > { %v323_v11 = vpop.permute.xlu0 %322  ;;  %v435_v14 = vpop.permute.xlu1 %434 }
 0x189   : > { %v329_v12 = vsel %vm324_vm2, %v323_v11, 0 }
 0x18a   : > { %1040 = vmatpush3.bf16.xpose.msra.mxu1 %v329_v12 }
 0x18b   : > { %1051 = vmatprep.subr.bf16.mxu1 %v1284_v0 }
 0x18c   : > { %v437_v13 = vpop.permute.xlu0 %436  ;;  %v549_v16 = vpop.permute.xlu1 %548 }
 0x18d   : > { %v442_v15 = vsel %vm324_vm2, %v437_v13, 0  ;;  %v554_v17 = vsel %vm324_vm2, %v549_v16, 0 }
 0x190   : > { %v661_v18 = vpop.permute.xlu1 %660  ;;  %v547_v19 = vpop.permute.xlu0 %546 }
 0x191   : > { %1042 = vmatmul.mubr.msk.bf16.vlgmr.msra.gmra.mrb[0].mxu1 %vm324_vm2, %v1439_v9  ;;  %v666_v20 = vsel %vm324_vm2, %v661_v18, 0 }
 0x192   : > { %1052 = vmatpush3.bf16.xpose.msra.mxu1 %v442_v15  ;;  %1053 = vmatprep.mubr.msk.bf16.mxu1 %vm1285_vm0, %v1284_v0 }
 0x193   : > { %1063 = vmatprep.subr.bf16.mxu1 %v1284_v0 }
 0x194   : > { %v659_v21 = vpop.permute.xlu0 %658 }
 0x199   : > { %1054 = vmatmul.mubr.msk.bf16.vlgmr.msra.gmra.mrb[4].mxu1 %vm324_vm2, %v435_v14 }
 0x19a   : > { %1064 = vmatpush3.bf16.xpose.msra.mxu1 %v554_v17  ;;  %1065 = vmatprep.mubr.msk.bf16.mxu1 %vm1285_vm0, %v1284_v0 }
 0x19b   : > { %1075 = vmatprep.subr.bf16.mxu1 %v1284_v0 }
 0x1a1   : > { %1066 = vmatmul.mubr.msk.bf16.vlgmr.msra.gmra.mrb[8].mxu1 %vm324_vm2, %v547_v19 }
 0x1a2   : > { %1076 = vmatpush3.bf16.xpose.msra.mxu1 %v666_v20  ;;  %1077 = vmatprep.mubr.msk.bf16.mxu1 %vm1285_vm0, %v1284_v0 }
 0x1a3   : > { %1087 = vmatprep.subr.bf16.mxu1 %v1284_v0 }
 0x1a9   : > { %1078 = vmatmul.mubr.msk.bf16.vlgmr.msra.gmra.mrb[12].mxu1 %vm324_vm2, %v659_v21 }
 0x1aa   : > { %1091 = vmatprep.mubr.msk.bf16.mxu1 %vm1285_vm0, %v1284_v0 }
 0x264   : > { %v365_v22 = vpop.f32.mrb[0].mxu1 }
 0x265   : > { %v371_v24 = vmul.f32 0.35355338, %v365_v22  ;;  %v1043_v25 = vpop.f32.mrb[1].mxu1 }
 0x266   : > { %v368_v26 = vpop.f32.mrb[2].mxu1 }
 0x267   : > { %v1044_v27 = vpop.f32.mrb[3].mxu1  ;;  %v372_v28 = vadd.f32 %v371_v24, %v319_v23 }
 0x269   : > { %v373_v29 = vsel %vm324_vm2, %v372_v28, -inf }
 0x26a   : > { %374 = vmax.xlane.f32.xlu1 %v373_v29 }
 0x26c   : > { %v478_v30 = vpop.f32.mrb[4].mxu1 }
 0x26d   : > { %v484_v31 = vmul.f32 0.35355338, %v478_v30  ;;  %v1055_v32 = vpop.f32.mrb[5].mxu1 }
 0x26e   : > { %v481_v33 = vpop.f32.mrb[6].mxu1 }
 0x26f   : > { %v1056_v34 = vpop.f32.mrb[7].mxu1  ;;  %v485_v35 = vadd.f32 %v484_v31, %v319_v23 }
 0x271   : > { %v486_v36 = vsel %vm324_vm2, %v485_v35, -inf }
 0x272   : > { %487 = vmax.xlane.f32.xlu0 %v486_v36 }
 0x274   : > { %v590_v37 = vpop.f32.mrb[8].mxu1 }
 0x275   : > { %v596_v38 = vmul.f32 0.35355338, %v590_v37  ;;  %v1067_v39 = vpop.f32.mrb[9].mxu1 }
 0x276   : > { %v593_v40 = vpop.f32.mrb[10].mxu1 }
 0x277   : > { %v1068_v41 = vpop.f32.mrb[11].mxu1  ;;  %v597_v42 = vadd.f32 %v596_v38, %v319_v23 }
 0x278   : > { %v1165_v41 = vld [vmem:[%s1574_s3] sm:$0xff]  }
 0x279   : > { %v598_v43 = vsel %vm324_vm2, %v597_v42, -inf  ;;  %1088 = vmatpush3.bf16.msra.mxu1 %v1165_v41 }
 0x27a   : > { %599 = vmax.xlane.f32.xlu0 %v598_v43  ;;  %1089 = vmatprep.subr.bf16.mxu1 %v1284_v0 }
 0x27c   : > { %v702_v44 = vpop.f32.mrb[12].mxu1 }
 0x27d   : > { %v708_v45 = vmul.f32 0.35355338, %v702_v44  ;;  %v1079_v46 = vpop.f32.mrb[13].mxu1 }
 0x27e   : > { %v705_v47 = vpop.f32.mrb[14].mxu1 }
 0x27f   : > { %v1080_v48 = vpop.f32.mrb[15].mxu1  ;;  %v709_v49 = vadd.f32 %v708_v45, %v319_v23 }
 0x281   : > { %v710_v50 = vsel %vm324_vm2, %v709_v49, -inf }
 0x282   : > { %711 = vmax.xlane.f32.xlu1 %v710_v50 }
 0x2f7   : > { %v375_v51 = vpop.xlane.xlu1 %374 }
 0x2f8   : > { %v376_v52 = vsub.f32 %v372_v28, %v375_v51 }
 0x2fa   : > { %v377_v53 = vmul.f32 1.442695, %v376_v52 }
 0x2fc   : > { %1167 = vpow2.f32 %v377_v53 }
 0x2ff   : > { %v488_v54 = vpop.xlane.xlu0 %487 }
 0x300   : > { %v489_v55 = vsub.f32 %v485_v35, %v488_v54 }
 0x302   : > { %v490_v56 = vmul.f32 1.442695, %v489_v55 }
 0x304   : > { %1169 = vpow2.f32 %v490_v56 }
 0x306   : > { %v1168_v57 = vpop.eup %1167 }
 0x307   : > { %v600_v58 = vpop.xlane.xlu0 %599  ;;  %v379_v59 = vsel %vm324_vm2, %v1168_v57, 0.0 }
 0x308   : > { %v601_v60 = vsub.f32 %v597_v42, %v600_v58  ;;  %380 = vadd.xlane.f32.xlu0 %v379_v59  ;;  %v1166_v42 = vld [vmem:[%s1574_s3 + $0x8] sm:$0xff]   ;;  %v852_v58 = vunpack.c.l.bf16 %v1429_v3 }
 0x309   : > { %1090 = vmatpush3.bf16.msra.mxu1 %v1166_v42 }
 0x30a   : > { %v602_v61 = vmul.f32 1.442695, %v601_v60 }
 0x30c   : > { %1171 = vpow2.f32 %v602_v61 }
 0x30e   : > { %v1170_v62 = vpop.eup %1169 }
 0x30f   : > { %v492_v63 = vsel %vm324_vm2, %v1170_v62, 0.0  ;;  %v712_v4 = vpop.xlane.xlu1 %711 }
 0x310   : > { %493 = vadd.xlane.f32.xlu1 %v492_v63  ;;  %v713_v5 = vsub.f32 %v709_v49, %v712_v4 }
 0x312   : > { %v714_v6 = vmul.f32 1.442695, %v713_v5 }
 0x314   : > { %1173 = vpow2.f32 %v714_v6 }
 0x316   : > { %v1172_v1 = vpop.eup %1171 }
 0x317   : > { %v604_v2 = vsel %vm324_vm2, %v1172_v1, 0.0 }
 0x318   : > { %605 = vadd.xlane.f32.xlu0 %v604_v2 }
 0x31e   : > { %v1174_v7 = vpop.eup %1173 }
 0x31f   : > { %v716_v8 = vsel %vm324_vm2, %v1174_v7, 0.0 }
 0x321   : > { %498 = vrot.lane.b32.xlu1 %v1439_v9, %s1293_s30 }
 0x32e   : > { %385 = vrot.lane.b32.xlu0 %v1439_v9, %s1294_s8 }
 0x332   : > { %722 = vrot.lane.b32.xlu0 %v1439_v9, %s1295_s9 }
 0x345   : > { %717 = vadd.xlane.f32.xlu1 %v716_v8 }
 0x356   : > { %610 = vrot.lane.b32.xlu1 %v1439_v9, %s1296_s10  ;;  %s1006_s10 = sshll.u32 %s1352_s22, 7  ;;  %s1300_s22 = smov [#allocation5]  }
 0x357   : > { %s1528_s15 = scalar_lea.hbm %s1576_s5, %s1006_s10  ;;  %s1217_s23 = sshll.u32 %s1300_s22, 4  ;;  %s1218_s23 = int_to_ptr.vmem [resolvable:$false] %s1217_s23 }
 0x358   : > { %s1219_s25 = scalar_lea.vmem %s1218_s23, 256 }
 0x395   : > { %v381_v10 = vpop.xlane.xlu0 %380 }
 0x396   : > { %1175 = vrcp.f32 %v381_v10 }
 0x39d   : > { %v494_v11 = vpop.xlane.xlu1 %493 }
 0x39e   : > { %1177 = vrcp.f32 %v494_v11 }
 0x3a0   : > { %v1176_v12 = vpop.eup %1175 }
 0x3a1   : > { %v383_v14 = vmul.f32 %v1176_v12, %v1168_v57  ;;  %v499_v17 = vpop.permute.xlu1 %498  ;;  %v999_v57 = vld [vmem:[%s1575_s4 + $0x1] ss:$0 sm:$0xff] }
 0x3a2   : > { %v504_v20 = vsel %vm390_vm3, %v499_v17, 0 }
 0x3a3   : > { %v384_v18 = vpack.c.bf16 %v383_v14, %v383_v14 }
 0x3a5   : > { %v606_v13 = vpop.xlane.xlu0 %605 }
 0x3a6   : > { %1179 = vrcp.f32 %v606_v13  ;;  %v1003_v13 = vld [vmem:[%s1575_s4 + $0x2] ss:$0 sm:$0xff] }
 0x3a8   : > { %v1178_v19 = vpop.eup %1177 }
 0x3a9   : > { %v386_v15 = vpop.permute.xlu0 %385  ;;  %v496_v9 = vmul.f32 %v1178_v19, %v1170_v62 }
 0x3aa   : > { %v392_v16 = vsel %vm390_vm3, %v386_v15, 0  ;;  %v1004_v15 = vld [vmem:[%s1575_s4 + $0x3] ss:$0 sm:$0xff] }
 0x3ab   : > { %1046 = vmatpush3.bf16.msra.mxu0 %v392_v16  ;;  %v497_v21 = vpack.c.bf16 %v496_v9, %v496_v9 }
 0x3ac   : > { %1057 = vmatprep.subr.bf16.mxu0 %v1284_v0 }
 0x3ad   : > { %v723_v27 = vpop.permute.xlu0 %722 }
 0x3ae   : > { %1048 = vmatmul.mubr.msk.bf16.vlgmr.msra.gmra.mrb[4].mxu0 %vm324_vm2, %v384_v18  ;;  %v728_v29 = vsel %vm390_vm3, %v723_v27, 0 }
 0x3af   : > { %1058 = vmatpush3.bf16.msra.mxu0 %v504_v20  ;;  %1059 = vmatprep.mubr.msk.bf16.mxu0 %vm1285_vm0, %v1284_v0 }
 0x3b0   : > { %1069 = vmatprep.subr.bf16.mxu0 %v1284_v0  ;;  %v1180_v22 = vpop.eup %1179 }
 0x3b1   : > { %v608_v24 = vmul.f32 %v1180_v22, %v1172_v1 }
 0x3b3   : > { %v609_v28 = vpack.c.bf16 %v608_v24, %v608_v24 }
 0x3b6   : > { %1060 = vmatmul.mubr.msk.bf16.vlgmr.msra.gmra.mrb[8].mxu0 %vm324_vm2, %v497_v21 }
 0x3b7   : > { %1071 = vmatprep.mubr.msk.bf16.mxu0 %vm1285_vm0, %v1284_v0 }
 0x3d2   : > { %v718_v23 = vpop.xlane.xlu1 %717 }
 0x3d3   : > { %1181 = vrcp.f32 %v718_v23 }
 0x3d6   : > { %v611_v25 = vpop.permute.xlu1 %610 }
 0x3d7   : > { %v616_v26 = vsel %vm390_vm3, %v611_v25, 0 }
 0x3d8   : > { %1070 = vmatpush3.bf16.msra.mxu0 %v616_v26 }
 0x3d9   : > { %1081 = vmatprep.subr.bf16.mxu0 %v1284_v0 }
 0x3db   : > { %1072 = vmatmul.mubr.msk.bf16.vlgmr.msra.gmra.mrb[12].mxu0 %vm324_vm2, %v609_v28 }
 0x3dc   : > { %1082 = vmatpush3.bf16.msra.mxu0 %v728_v29  ;;  %1083 = vmatprep.mubr.msk.bf16.mxu0 %vm1285_vm0, %v1284_v0 }
 0x3dd   : > { %v1182_v30 = vpop.eup %1181 }
 0x3de   : > { %v720_v31 = vmul.f32 %v1182_v30, %v1174_v7 }
 0x3e0   : > { %v721_v32 = vpack.c.bf16 %v720_v31, %v720_v31 }
 0x3e3   : > { %1084 = vmatmul.mubr.msk.bf16.vlgmr.msra.gmra.mrb[16].mxu0 %vm324_vm2, %v721_v32 }
 0x481   : > { %v428_v33 = vpop.f32.mrb[4].mxu0 }
 0x482   : > { %v1049_v34 = vpop.f32.mrb[5].mxu0 }
 0x483   : > { %v431_v35 = vpop.f32.mrb[6].mxu0 }
 0x484   : > { %v1050_v36 = vpop.f32.mrb[7].mxu0 }
 0x489   : > { %v540_v37 = vpop.f32.mrb[8].mxu0 }
 0x48a   : > { %771 = vrot.lane.b32.xlu1 %v540_v37, %s1297_s11  ;;  %v1061_v38 = vpop.f32.mrb[9].mxu0  ;;  %s243_s11 = scalar_lea.vmem [#allocation5], %s984_s6 }
 0x48b   : > { %v543_v39 = vpop.f32.mrb[10].mxu0  ;;  %s895_s12 = sshll.u32 %s243_s11, 4  ;;  %s1530_s12 = int_to_ptr.vmem [resolvable:$true] %s895_s12 }
 0x48c   : > { %v1062_v40 = vpop.f32.mrb[11].mxu0  ;;  %p1220_p2 = scmp.lt.s32.totalorder %s1530_s12, %s1218_s23 }
 0x4ae   : > { %v652_v43 = vpop.f32.mrb[12].mxu0 }
 0x4af   : > { %775 = vrot.lane.b32.xlu0 %v652_v43, %s1298_s16  ;;  %v1073_v44 = vpop.f32.mrb[13].mxu0  ;;  %s882_s16 = scalar_lea.sflag [#allocation4], %s241_s26 }
 0x4b0   : > { %v655_v45 = vpop.f32.mrb[14].mxu0 }
 0x4b1   : > { %v1074_v46 = vpop.f32.mrb[15].mxu0 }
 0x4b6   : > { %v764_v47 = vpop.f32.mrb[16].mxu0 }
 0x4b7   : > { %779 = vrot.lane.b32.xlu1 %v764_v47, %s1299_s17  ;;  %v1085_v48 = vpop.f32.mrb[17].mxu0  ;;  %s1213_s17 = scalar_lea.vmem %s1530_s12, 128 }
 0x4b8   : > { %v767_v49 = vpop.f32.mrb[18].mxu0  ;;  %p1214_p6 = scmp.ne.s32.totalorder %s1530_s12, %s1213_s17  ;;  %p1221_p3 = scmp.lt.s32.totalorder %s1219_s25, %s1213_s17 }
 0x4b9   : > { %v1086_v50 = vpop.f32.mrb[19].mxu0 }
 0x4ba   : > { %p1215_p10 = pnand %p1214_p6, %p1587_p9  ;;  %p1222_p4 = por %p1221_p3, %p1220_p2 }
 0x4bc   : > { %p1216_p12 = pneg %p1215_p10 }
 0x4be   : > { %p1223_p7 = pnand %p1222_p4, %p1216_p12 }
 0x4fc   : > { %v772_v51 = vpop.permute.xlu1 %771 }
 0x4fd   : > { %v782_v52 = vsel %vm324_vm2, %v428_v33, %v772_v51 }
 0x521   : > { %v776_v0 = vpop.permute.xlu0 %775 }
 0x522   : > { %v784_v53 = vsel %vm783_vm4, %v782_v52, %v776_v0 }
 0x529   : > { %v780_v54 = vpop.permute.xlu1 %779 }
 0x52a   : > { %v786_v55 = vsel %vm785_vm5, %v784_v53, %v780_v54 }
 0x52b   : > { %v787_v56 = vpack.c.bf16 %v786_v55, %v786_v55 }
 0x52d   : > { %1092 = vmatmul.mubr.msk.bf16.vlgmr.msra.gmra.mrb[16].mxu1 %vm275_vm1, %v787_v56 }
 0x600   : > { %v846_v59 = vpop.f32.mrb[16].mxu1 }
 0x601   : > { %v847_v60 = vadd.f32 %v999_v57, %v846_v59  ;;  %v1093_v61 = vpop.f32.mrb[17].mxu1 }
 0x602   : > { %v849_v62 = vpop.f32.mrb[18].mxu1 }
 0x603   : > { %v1094_v63 = vpop.f32.mrb[19].mxu1  ;;  %v853_v1 = vadd.f32 %v852_v58, %v847_v60 }
 0x605   : > { %v854_v2 = vsel %vm275_vm1, %v853_v1, 0.0 }
 0x606   : > { %855 = vadd.xlane.f32.xlu0 %v854_v2 }
 0x693   : > { %v856_v4 = vpop.xlane.xlu0 %855 }
 0x694   : > { %v858_v5 = vmul.f32 0.03125, %v856_v4 }
 0x696   : > { %v859_v6 = vsub.f32 %v853_v1, %v858_v5 }
 0x698   : > { %v860_v7 = vmul.f32 %v859_v6, %v859_v6 }
 0x69a   : > { %v861_v8 = vsel %vm275_vm1, %v860_v7, 0.0 }
 0x69b   : > { %862 = vadd.xlane.f32.xlu1 %v861_v8 }
 0x728   : > { %v863_v10 = vpop.xlane.xlu1 %862 }
 0x729   : > { %v864_v3 = vmul.f32 0.03125, %v863_v10 }
 0x72b   : > { %v865_v11 = vadd.f32 1e-05, %v864_v3 }
 0x72d   : > { %1183 = vrsqrt.f32 %v865_v11 }
 0x737   : > { %v1184_v12 = vpop.eup %1183 }
 0x738   : > { %v867_v14 = vmul.f32 %v1184_v12, %v859_v6 }
 0x73a   : > { %v873_v16 = vmul.f32 %v1003_v13, %v867_v14 }
 0x73c   : > { %v879_v17 = vadd.f32 %v1004_v15, %v873_v16 }
 0x73e   : > { %880 = vst.msk [vmem:[%s243_s11] sm:$0xff] %vm275_vm1, %v879_v17 }
 0x73f   : > { %1226 = shalt.err (!%p1223_p7)
}
 0x740   : > { %s1227_s26 = scalar_lea.hbm %s1528_s15, 128  ;;  %s1231_s30 = scalar_lea.hbm %s1576_s5, 256 }
 0x741   : > { %p1228_p8 = scmp.ne.s32.totalorder %s1528_s15, %s1227_s26  ;;  %p1232_p1 = scmp.lt.u32.totalorder %s1528_s15, %s1576_s5 }
 0x742   : > { %p1233_p0 = scmp.lt.u32.totalorder %s1231_s30, %s1227_s26  ;;  %p1235_p6 = scmp.lt.u32.totalorder %s1227_s26, %s1528_s15 }
 0x743   : > { %p1229_p11 = pnand %p1228_p8, %p1587_p9 }
 0x744   : > { %p1234_p5 = por %p1233_p0, %p1232_p1 }
 0x745   : > { %p1230_p13 = pneg %p1229_p11 }
 0x746   : > { %p1236_p10 = por %p1235_p6, %p1234_p5 }
 0x748   : > { %p1237_p12 = pnand %p1236_p10, %p1230_p13 }
 0x74a   : > { %1240 = shalt.err (!%p1237_p12)
}
 0x74b   : > { %1099 = dma.vmem_to_hbm [thread:$0]  (%p1587_p9), %s1530_s12, 128, %s1528_s15, %s882_s16  }
 0x74c PF: > { %p1111_p2 = scmp.ge.s32.totalorder %s1279_s21, 2  ;;  %s907_s10 = sand.u32 1, %s1267_s18  }
 0x74d   : > { %p1588_p3 = scmp.ne.s32.totalorder %s1581_s29, 0  ;;  %s908_s11 = scalar_lea.sflag [#allocation4], %s907_s10 }
 0x74f   : > { %p1106_p4 = pnand %p1111_p2, %p1588_p3 }
 0x751   : > { %1262 = dma.done.wait (!%p1106_p4), %s908_s11, 128  }
 0x752   : > { %1264 = vsyncadd (!%p1106_p4), %s908_s11, 4294967168  ;;  %p16_p7 = scmp.ge.s32.totalorder %s1356_s24, 4   ;;  %s1589_s18 = smov %s1271_s19 }
 0x753   : > { %s1590_s19 = smov %s1275_s20  ;;  %s1591_s20 = smov %s1367_s27 }
 0x754   : > { %s1592_s21 = smov %s1356_s24  ;;  %18 = sbr.rel (!%p16_p7) target bundleno = 4 (0x4), region = 83 }
 0x75b   :  { %913 = vsyncpa [#allocation3], 1 }
 0x75c   :  { %915 = vsyncpa [#allocation3 + $0x1], 1 }
 0x75d   :  { %916 = vsyncpa [#allocation4], 1 }
 0x75e   :  { %918 = vsyncpa [#allocation4 + $0x1], 1 }

</bundles_post_ra>
